<compile_context>
chip_gen: v7x
topology: tpu7x:2x2x1
jax: 0.10.0
libtpu: 0.0.40
codegen_flags: <defaults>
</compile_context>

<pallas_src>
import math
import jax
import jax.numpy as jnp
from jax import lax
from jax.experimental import pallas as pl
from jax.experimental.pallas import tpu as pltpu

D_K = 64
D_V = 64
_INV_SQRT_DK = 1.0 / math.sqrt(D_K)   # == 0.125 exactly -> lossless pre-scale of Q
_LANE = 128


# ----------------------------------------------------------------- kernel ---

def _sdpa_kernel(q_ref, k_ref, v_ref, mask_ref, ctx_ref, attn_ref):
    """One grid step: G (batch, head) pairs x one TQ-row query tile.

    q_ref:    (G, TQ, D_K)        input dtype (bf16 / f32)
    k_ref:    (G, Lk, D_K)
    v_ref:    (G, Lk, D_V)
    mask_ref: (G or 1, TQ, Lk)    int8, nonzero => masked
    ctx_ref:  (G, TQ, D_V)        input dtype
    attn_ref: (G, TQ, Lk)         input dtype
    """
    # Scale Q (TQ*dk elems) instead of scores (TQ*Lk): exact, 0.125 = 2^-3.
    q = q_ref[...] * _INV_SQRT_DK
    k = k_ref[...]
    v = v_ref[...]

    # scores = Q @ K^T, batched over G, contracting on d_k (no explicit K^T).
    scores = lax.dot_general(
        q, k,
        dimension_numbers=(((2,), (2,)), ((0,), (0,))),
        preferred_element_type=jnp.float32,
    )  # (G, TQ, Lk) f32

    # masked_fill(mask, -1e9); a shared (1, TQ, Lk) mask block broadcasts over G.
    scores = jnp.where(mask_ref[...] != 0, jnp.float32(-1e9), scores)

    # Numerically stable softmax over the key axis, in f32.
    s_max = jnp.max(scores, axis=-1, keepdims=True)
    e = jnp.exp(scores - s_max)
    denom = jnp.sum(e, axis=-1, keepdims=True)
    # Reciprocal on the small (G, TQ, 1) vector + broadcast multiply instead of
    # a full (G, TQ, Lk) divide: ~Lk x less VALU divide work.
    inv = 1.0 / denom
    p = (e * inv).astype(v_ref.dtype)   # single cast, reused for the attn output

    # context = attn @ V, feeding the MXU in the input dtype (bf16 fast path).
    ctx = lax.dot_general(
        p, v,
        dimension_numbers=(((2,), (1,)), ((0,), (0,))),
        preferred_element_type=jnp.float32,
    )  # (G, TQ, D_V) f32

    ctx_ref[...] = ctx.astype(ctx_ref.dtype)
    attn_ref[...] = p   # attn_ref dtype == v dtype == input dtype; no re-cast


# --------------------------------------------------------------- planning ---

def _round_up(x, m):
    return (x + m - 1) // m * m


def _device_kind():
    try:
        return jax.devices()[0].device_kind.lower()
    except Exception:
        return ""


def _tpu_vmem_capacity_bytes():
    try:
        cap = int(pltpu.get_tpu_info().vmem_capacity_bytes)
        if cap > 0:
            return cap
    except Exception:
        pass
    kind = _device_kind()
    if "v7" in kind or "7x" in kind:
        return 64 << 20
    if any(t in kind for t in ("v6", "v5", "v4")):
        return 128 << 20
    return 64 << 20          # conservative (v7x-sized) default


def _hw_params():
    """(vmem_budget_bytes, vmem_limit_bytes, tq_target) for the local TPU."""
    cap = _tpu_vmem_capacity_bytes()
    kind = _device_kind()
    # Leave headroom below physical capacity for Mosaic's own scratch; never
    # ask for more than ~96 MiB even on 128 MiB parts (v5e/v6e), ~48 MiB on v7x.
    vmem_limit = max(32 << 20, min(cap - (16 << 20), 96 << 20))
    budget = int(vmem_limit * 0.85)
    # v6e/v7x MXUs are 2x256x256: prefer 256-row query tiles when they fit.
    tq_target = 256 if ("v6" in kind or "v7" in kind) else 128
    return budget, vmem_limit, tq_target


def _step_vmem_bytes(G, TQ, Lk, itemsize, mask_rows):
    """VMEM one grid step needs: double-buffered in/out blocks (d_k=d_v=64
    arrays occupy 128-lane-padded VMEM) plus the un-pipelined f32 score
    temporaries (scores, e, normalized probs)."""
    d_pad = _LANE
    lk_pad = _round_up(max(Lk, _LANE), _LANE)
    q_blk = G * TQ * d_pad * itemsize
    k_blk = G * Lk * d_pad * itemsize
    v_blk = G * Lk * d_pad * itemsize
    m_blk = mask_rows * TQ * lk_pad            # int8
    c_blk = G * TQ * d_pad * itemsize
    a_blk = G * TQ * lk_pad * itemsize
    pipelined = 2 * (q_blk + k_blk + v_blk + m_blk + c_blk + a_blk)
    temporaries = 3 * G * TQ * lk_pad * 4      # f32 scores / e / probs
    return pipelined + temporaries


def _plan_tiles(BH, H, Lq, Lk, itemsize, budget_bytes, tq_target,
                group_divides_h, mask_per_group):
    """Pick (TQ, G): largest query tile (<= tq_target) dividing Lq, then the
    largest group of (batch, head) rows that keeps one step within budget."""
    tq_cands = []
    for t in (tq_target, 256, 128, 64, 32, 16, 8):
        if t <= Lq and Lq % t == 0 and t not in tq_cands:
            tq_cands.append(t)
    if not tq_cands:
        tq_cands = [Lq]                        # full-extent block is always legal
    g_limit = H if group_divides_h else BH
    g_cands = [g for g in (16, 8, 4, 2, 1)
               if g <= g_limit and g_limit % g == 0 and BH % g == 0]
    for TQ in tq_cands:
        for G in g_cands:
            mask_rows = G if mask_per_group else 1
            if _step_vmem_bytes(G, TQ, Lk, itemsize, mask_rows) <= budget_bytes:
                return TQ, G
    # Nothing fits the budget: smallest legal tile, no grouping.
    # TODO(synk): for very long Lk an Lk tile (online softmax) would be needed;
    # this module's d_k=64 workloads stay far below that regime.
    return tq_cands[-1], 1


# ---------------------------------------------------------------- wrapper ---

def scaled_dot_product_attention(Q, K, V, attn_mask):
    """Q: [B,H,Lq,d_k], K: [B,H,Lk,d_k], V: [B,H,Lk,d_v],
    attn_mask: bool, broadcastable to [B,H,Lq,Lk] (True => masked).
    Returns (context [B,H,Lq,d_v], attn [B,H,Lq,Lk]) in Q's dtype."""
    B, H, Lq, dk = Q.shape
    Lk = K.shape[2]
    dv = V.shape[3]
    BH = B * H
    dtype = Q.dtype
    itemsize = jnp.dtype(dtype).itemsize

    if attn_mask.ndim != 4:
        attn_mask = jnp.broadcast_to(attn_mask, (B, H, Lq, Lk))
    mb, mh = attn_mask.shape[0], attn_mask.shape[1]
    shared_mask = (mb == 1 and mh == 1)
    head_bcast = (not shared_mask) and (mh == 1) and (mb == B) and (H > 1)

    budget, vmem_limit, tq_target = _hw_params()
    TQ, G = _plan_tiles(
        BH, H, Lq, Lk, itemsize, budget, tq_target,
        group_divides_h=head_bcast,
        mask_per_group=not (shared_mask or head_bcast))
    grid = (BH // G, Lq // TQ)

    qf = Q.reshape(BH, Lq, dk)
    kf = K.reshape(BH, Lk, dk)
    vf = V.reshape(BH, Lk, dv)

    # Mask as int8 (4x less HBM than int32); keep the smallest possible copy.
    if shared_mask:
        mf = attn_mask.reshape(1, Lq, Lk).astype(jnp.int8)
        mask_spec = pl.BlockSpec((1, TQ, Lk), lambda g, qi: (0, qi, 0))
    elif head_bcast:
        # One int8 copy per batch; every group maps to exactly one batch
        # because G divides H.
        groups_per_batch = H // G
        mf = attn_mask.reshape(B, Lq, Lk).astype(jnp.int8)
        mask_spec = pl.BlockSpec(
            (1, TQ, Lk), lambda g, qi: (g // groups_per_batch, qi, 0))
    else:
        mf = (jnp.broadcast_to(attn_mask, (B, H, Lq, Lk))
              .reshape(BH, Lq, Lk).astype(jnp.int8))
        mask_spec = pl.BlockSpec((G, TQ, Lk), lambda g, qi: (g, qi, 0))

    ctx, attn = pl.pallas_call(
        _sdpa_kernel,
        out_shape=(
            jax.ShapeDtypeStruct((BH, Lq, dv), dtype),
            jax.ShapeDtypeStruct((BH, Lq, Lk), dtype),
        ),
        grid_spec=pltpu.PrefetchScalarGridSpec(
            num_scalar_prefetch=0,
            grid=grid,
            in_specs=[
                pl.BlockSpec((G, TQ, dk), lambda g, qi: (g, qi, 0)),
                pl.BlockSpec((G, Lk, dk), lambda g, qi: (g, 0, 0)),
                pl.BlockSpec((G, Lk, dv), lambda g, qi: (g, 0, 0)),
                mask_spec,
            ],
            out_specs=[
                pl.BlockSpec((G, TQ, dv), lambda g, qi: (g, qi, 0)),
                pl.BlockSpec((G, TQ, Lk), lambda g, qi: (g, qi, 0)),
            ],
        ),
        compiler_params=pltpu.CompilerParams(
            # Shard only the (batch, head)-group axis across cores; keeping the
            # query-tile axis "arbitrary" makes qi iterations consecutive per
            # core, so the K/V blocks (same block index for every qi) are not
            # re-DMA'd on multi-TC chips (v7x).
            dimension_semantics=("parallel", "arbitrary"),
            vmem_limit_bytes=vmem_limit,
        ),
    )(qf, kf, vf, mf)

    return ctx.reshape(B, H, Lq, dv), attn.reshape(B, H, Lq, Lk)


# -------------------------------------------------------------- reference ---

def _reference(Q, K, V, attn_mask):
    Qf, Kf, Vf = (x.astype(jnp.float32) for x in (Q, K, V))
    scores = jnp.einsum("bhqd,bhkd->bhqk", Qf, Kf) * _INV_SQRT_DK
    scores = jnp.where(attn_mask, -1e9, scores)
    attn = jax.nn.softmax(scores, axis=-1)
    ctx = jnp.einsum("bhqk,bhkd->bhqd", attn, Vf)
    return ctx, attn


if __name__ == "__main__":
    key = jax.random.PRNGKey(0)
    B, H, L = 2, 2, 8  # small shapes; d_k = d_v = 64 fixed by the module
    kq, kk, kv = jax.random.split(key, 3)
    Q = jax.random.normal(kq, (B, H, L, D_K), dtype=jnp.float32)
    K = jax.random.normal(kk, (B, H, L, D_K), dtype=jnp.float32)
    V = jax.random.normal(kv, (B, H, L, D_V), dtype=jnp.float32)

    causal = jnp.triu(jnp.ones((L, L), dtype=bool), k=1)  # True => masked out

    # --- f32 path, per-(batch, head) mask --------------------------------
    mask_full = jnp.broadcast_to(causal, (B, H, L, L))
    ctx, attn = scaled_dot_product_attention(Q, K, V, mask_full)
    jax.block_until_ready((ctx, attn))
    ctx_ref, attn_ref = _reference(Q, K, V, mask_full)
    assert jnp.allclose(ctx, ctx_ref, atol=1e-4, rtol=1e-4)
    assert jnp.allclose(attn, attn_ref, atol=1e-5, rtol=1e-4)

    # --- bf16 fast path, mask shared across batch & heads ----------------
    mask_shared = causal[None, None]  # (1, 1, L, L)
    Qb, Kb, Vb = (x.astype(jnp.bfloat16) for x in (Q, K, V))
    ctx_b, attn_b = scaled_dot_product_attention(Qb, Kb, Vb, mask_shared)
    jax.block_until_ready((ctx_b, attn_b))
    ctx_rb, attn_rb = _reference(Qb, Kb, Vb,
                                 jnp.broadcast_to(mask_shared, (B, H, L, L)))
    assert jnp.allclose(ctx_b.astype(jnp.float32), ctx_rb, atol=5e-2, rtol=5e-2)
    assert jnp.allclose(attn_b.astype(jnp.float32), attn_rb, atol=2e-2, rtol=2e-2)

    # --- bf16 path, head-broadcast (B, 1, Lq, Lk) padding mask, longer seq ---
    B2, H2, L2 = 2, 4, 256
    k1, k2, k3 = jax.random.split(jax.random.PRNGKey(1), 3)
    Q2 = jax.random.normal(k1, (B2, H2, L2, D_K), dtype=jnp.bfloat16)
    K2 = jax.random.normal(k2, (B2, H2, L2, D_K), dtype=jnp.bfloat16)
    V2 = jax.random.normal(k3, (B2, H2, L2, D_V), dtype=jnp.bfloat16)
    key_len = jnp.array([200, 256])
    pad = jnp.arange(L2)[None, :] >= key_len[:, None]              # (B2, L2)
    mask_hb = jnp.broadcast_to(pad[:, None, None, :], (B2, 1, L2, L2))
    ctx2, attn2 = scaled_dot_product_attention(Q2, K2, V2, mask_hb)
    jax.block_until_ready((ctx2, attn2))
    ctx2_ref, attn2_ref = _reference(
        Q2, K2, V2, jnp.broadcast_to(mask_hb, (B2, H2, L2, L2)))
    assert jnp.allclose(ctx2.astype(jnp.float32), ctx2_ref, atol=5e-2, rtol=5e-2)
    assert jnp.allclose(attn2.astype(jnp.float32), attn2_ref, atol=2e-2, rtol=2e-2)

    print("KERNEL_OK")
</pallas_src>

<mosaic_0001>
module attributes {stable_mosaic.version = 11 : i64} {
  func.func @_sdpa_kernel(%arg0: i32, %arg1: i32, %arg2: memref<4x8x64xf32, #tpu.memory_space<vmem>>, %arg3: memref<4x8x64xf32, #tpu.memory_space<vmem>>, %arg4: memref<4x8x64xf32, #tpu.memory_space<vmem>>, %arg5: memref<4x8x8xi8, #tpu.memory_space<vmem>>, %arg6: memref<4x8x64xf32, #tpu.memory_space<vmem>>, %arg7: memref<4x8x8xf32, #tpu.memory_space<vmem>>) attributes {dimension_semantics = [#tpu.dimension_semantics<parallel>, #tpu.dimension_semantics<arbitrary>], iteration_bounds = array<i64: 1, 1>, scalar_prefetch = 0 : i64, scratch_operands = 0 : i64, tpu.core_type = #tpu.core_type<tc>, window_params = [{transform_indices = @transform_0, window_bounds = array<i64: 4, 8, 64>}, {transform_indices = @transform_1, window_bounds = array<i64: 4, 8, 64>}, {transform_indices = @transform_2, window_bounds = array<i64: 4, 8, 64>}, {transform_indices = @transform_3, window_bounds = array<i64: 4, 8, 8>}, {transform_indices = @transform_4, window_bounds = array<i64: 4, 8, 64>}, {transform_indices = @transform_5, window_bounds = array<i64: 4, 8, 8>}]} {
    %c0 = arith.constant 0 : index
    %c0_0 = arith.constant 0 : index
    %c0_1 = arith.constant 0 : index
    %0 = vector.load %arg2[%c0, %c0_0, %c0_1] : memref<4x8x64xf32, #tpu.memory_space<vmem>>, vector<4x8x64xf32>
    %cst = arith.constant 1.250000e-01 : f32
    %1 = vector.broadcast %cst : f32 to vector<4x8x64xf32>
    %2 = arith.mulf %0, %1 : vector<4x8x64xf32>
    %c0_2 = arith.constant 0 : index
    %c0_3 = arith.constant 0 : index
    %c0_4 = arith.constant 0 : index
    %3 = vector.load %arg3[%c0_2, %c0_3, %c0_4] : memref<4x8x64xf32, #tpu.memory_space<vmem>>, vector<4x8x64xf32>
    %c0_5 = arith.constant 0 : index
    %c0_6 = arith.constant 0 : index
    %c0_7 = arith.constant 0 : index
    %4 = vector.load %arg4[%c0_5, %c0_6, %c0_7] : memref<4x8x64xf32, #tpu.memory_space<vmem>>, vector<4x8x64xf32>
    %cst_8 = arith.constant dense<0.000000e+00> : vector<4x8x8xf32>
    %5 = tpu.matmul %2, %3, %cst_8 {dimension_numbers = #tpu.dot_dimension_numbers<[2], [2], [1], [1], [0, 0, 0, 1, 1, 1], [0], [0]>} : vector<4x8x64xf32>, vector<4x8x64xf32>, vector<4x8x8xf32> -> vector<4x8x8xf32>
    %c0_9 = arith.constant 0 : index
    %c0_10 = arith.constant 0 : index
    %c0_11 = arith.constant 0 : index
    %6 = vector.load %arg5[%c0_9, %c0_10, %c0_11] : memref<4x8x8xi8, #tpu.memory_space<vmem>>, vector<4x8x8xi8>
    %c0_i8 = arith.constant 0 : i8
    %7 = vector.broadcast %c0_i8 : i8 to vector<4x8x8xi8>
    %8 = arith.cmpi ne, %6, %7 : vector<4x8x8xi8>
    %cst_12 = arith.constant -1.000000e+09 : f32
    %9 = vector.broadcast %cst_12 : f32 to vector<4x8x8xf32>
    %10 = arith.select %8, %9, %5 : vector<4x8x8xi1>, vector<4x8x8xf32>
    %cst_13 = arith.constant dense<0xFF800000> : vector<4x8xf32>
    %11 = vector.multi_reduction <maximumf>, %10, %cst_13 [2] : vector<4x8x8xf32> to vector<4x8xf32>
    %12 = vector.shape_cast %11 : vector<4x8xf32> to vector<4x8x1xf32>
    %13 = vector.broadcast %12 : vector<4x8x1xf32> to vector<4x8x8xf32>
    %14 = arith.subf %10, %13 : vector<4x8x8xf32>
    %15 = math.exp %14 : vector<4x8x8xf32>
    %cst_14 = arith.constant dense<0.000000e+00> : vector<4x8xf32>
    %16 = vector.multi_reduction <add>, %15, %cst_14 [2] : vector<4x8x8xf32> to vector<4x8xf32>
    %17 = vector.shape_cast %16 : vector<4x8xf32> to vector<4x8x1xf32>
    %cst_15 = arith.constant 1.000000e+00 : f32
    %18 = vector.broadcast %cst_15 : f32 to vector<4x8x1xf32>
    %19 = arith.divf %18, %17 : vector<4x8x1xf32>
    %20 = vector.broadcast %19 : vector<4x8x1xf32> to vector<4x8x8xf32>
    %21 = arith.mulf %15, %20 : vector<4x8x8xf32>
    %cst_16 = arith.constant dense<0.000000e+00> : vector<4x8x64xf32>
    %22 = tpu.matmul %21, %4, %cst_16 {dimension_numbers = #tpu.dot_dimension_numbers<[2], [1], [1], [2], [0, 0, 0, 1, 1, 2], [0], [0]>} : vector<4x8x8xf32>, vector<4x8x64xf32>, vector<4x8x64xf32> -> vector<4x8x64xf32>
    %c0_17 = arith.constant 0 : index
    %c0_18 = arith.constant 0 : index
    %c0_19 = arith.constant 0 : index
    %23 = vector.load %arg6[%c0_17, %c0_18, %c0_19] : memref<4x8x64xf32, #tpu.memory_space<vmem>>, vector<4x8x64xf32>
    tpu.vector_store %arg6[%c0_17, %c0_18, %c0_19], %22 {strides = array<i32>} : memref<4x8x64xf32, #tpu.memory_space<vmem>>, vector<4x8x64xf32>,
    %c0_20 = arith.constant 0 : index
    %c0_21 = arith.constant 0 : index
    %c0_22 = arith.constant 0 : index
    %24 = vector.load %arg7[%c0_20, %c0_21, %c0_22] : memref<4x8x8xf32, #tpu.memory_space<vmem>>, vector<4x8x8xf32>
    tpu.vector_store %arg7[%c0_20, %c0_21, %c0_22], %21 {strides = array<i32>} : memref<4x8x8xf32, #tpu.memory_space<vmem>>, vector<4x8x8xf32>,
    return
  }
  func.func @transform_0(%arg0: i32, %arg1: i32) -> (i32, i32, i32) {
    %c0_i32 = arith.constant 0 : i32
    %c0_i32_0 = arith.constant 0 : i32
    return %arg0, %arg1, %c0_i32 : i32, i32, i32
  }
  func.func @transform_1(%arg0: i32, %arg1: i32) -> (i32, i32, i32) {
    %c0_i32 = arith.constant 0 : i32
    %c0_i32_0 = arith.constant 0 : i32
    %c0_i32_1 = arith.constant 0 : i32
    return %arg0, %c0_i32, %c0_i32_0 : i32, i32, i32
  }
  func.func @transform_2(%arg0: i32, %arg1: i32) -> (i32, i32, i32) {
    %c0_i32 = arith.constant 0 : i32
    %c0_i32_0 = arith.constant 0 : i32
    %c0_i32_1 = arith.constant 0 : i32
    return %arg0, %c0_i32, %c0_i32_0 : i32, i32, i32
  }
  func.func @transform_3(%arg0: i32, %arg1: i32) -> (i32, i32, i32) {
    %c0_i32 = arith.constant 0 : i32
    %c0_i32_0 = arith.constant 0 : i32
    return %arg0, %arg1, %c0_i32 : i32, i32, i32
  }
  func.func @transform_4(%arg0: i32, %arg1: i32) -> (i32, i32, i32) {
    %c0_i32 = arith.constant 0 : i32
    %c0_i32_0 = arith.constant 0 : i32
    return %arg0, %arg1, %c0_i32 : i32, i32, i32
  }
  func.func @transform_5(%arg0: i32, %arg1: i32) -> (i32, i32, i32) {
    %c0_i32 = arith.constant 0 : i32
    %c0_i32_0 = arith.constant 0 : i32
    return %arg0, %arg1, %c0_i32 : i32, i32, i32
  }
}

</mosaic_0001>

<bundles_post_ra>
// kernel: tpu_custom_call.1
= control target key start
LH: loop header
LB: loop body
LE: loop exit
PB: predicated region body
PF: predicated region fallthrough
CT: control target
= control target key end

     0   :  { %11 = vsyncpa [#allocation3], 0  ;;  %s1190_s0 = inlined_call_operand.hbm [shape: f32[4,8,64], index: 0, kind: input, shape index: {}]   ;;  %s1191_s1 = inlined_call_operand.hbm [shape: f32[4,8,64], index: 1, kind: input, shape index: {}]   ;;  %s1192_s2 = inlined_call_operand.hbm [shape: f32[4,8,64], index: 2, kind: input, shape index: {}]   ;;  %s1193_s3 = inlined_call_operand.vmem [shape: s8[4,8,8], index: 3, kind: input, shape index: {}]   ;;  %s1194_s4 = inlined_call_operand.hbm [shape: f32[4,8,64], index: 4, kind: output, shape index: {0}]   ;;  %s1195_s5 = inlined_call_operand.hbm [shape: f32[4,8,8], index: 5, kind: output, shape index: {1}]  }
   0x1   :  { %12 = vsyncpa [#allocation6], 0 }
   0x2   :  { %13 = vsyncpa [#allocation4], 0 }
   0x3   :  { %14 = vsyncpa [#allocation10], 0  ;;  %s1004_s18 = smov [#allocation5]   ;;  %s1005_s20 = smov [#allocation2]  }
   0x4   :  { %s32_s19 = sshll.u32 %s1004_s18, 4  ;;  %s20_s21 = sshll.u32 %s1005_s20, 4  ;;  %s33_s19 = int_to_ptr.vmem [resolvable:$true] %s32_s19  ;;  %s1044_s21 = int_to_ptr.vmem [resolvable:$true] %s20_s21 }
   0x5   :  { %s886_s24 = scalar_lea.hbm %s1191_s1, 512 }
   0x6   :  { %p887_p0 = scmp.ne.s32.totalorder %s1191_s1, %s886_s24  ;;  %p890_p1 = scmp.lt.u32.totalorder %s886_s24, %s1191_s1 }
   0x8   :  { %p892_p2 = pnand %p890_p1, %p887_p0 }
   0xa   :  { %895 = shalt.err (!%p892_p2)
}
   0xb   :  { %s896_s29 = scalar_lea.vmem %s33_s19, 512  ;;  %p901_p4 = scmp.lt.s32.totalorder %s33_s19, %s33_s19 }
   0xc   :  { %p897_p3 = scmp.ne.s32.totalorder %s33_s19, %s896_s29  ;;  %p902_p5 = scmp.lt.s32.totalorder %s896_s29, %s896_s29 }
   0xe   :  { %p903_p6 = por %p902_p5, %p901_p4 }
  0x10   :  { %p904_p7 = pnand %p903_p6, %p897_p3 }
  0x12   :  { %907 = shalt.err (!%p904_p7)
}
  0x13   :  { %s1006_s30 = smov 128   ;;  %s1007_s6 = smov 8  }
  0x14   :  { %38 = dma.hbm_to_vmem [thread:$0]  %s1191_s1, 512, %s33_s19, [#allocation6], %s1006_s30, %s1006_s30, %s1007_s6  }
  0x15   :  { %s908_s11 = scalar_lea.hbm %s1190_s0, 512 }
  0x16   :  { %p909_p8 = scmp.ne.s32.totalorder %s1190_s0, %s908_s11  ;;  %p912_p9 = scmp.lt.u32.totalorder %s908_s11, %s1190_s0 }
  0x18   :  { %p914_p10 = pnand %p912_p9, %p909_p8 }
  0x1a   :  { %917 = shalt.err (!%p914_p10)
}
  0x1b   :  { %s918_s16 = scalar_lea.vmem %s1044_s21, 512  ;;  %p923_p12 = scmp.lt.s32.totalorder %s1044_s21, %s1044_s21 }
  0x1c   :  { %p919_p11 = scmp.ne.s32.totalorder %s1044_s21, %s918_s16  ;;  %p924_p13 = scmp.lt.s32.totalorder %s918_s16, %s918_s16 }
  0x1e   :  { %p925_p0 = por %p924_p13, %p923_p12 }
  0x20   :  { %p926_p1 = pnand %p925_p0, %p919_p11 }
  0x22   :  { %929 = shalt.err (!%p926_p1)
}
  0x23   :  { %26 = dma.hbm_to_vmem [thread:$0]  %s1190_s0, 512, %s1044_s21, [#allocation3], %s1006_s30, %s1006_s30, %s1007_s6  }
  0x24   :  { %s1008_s18 = smov [#allocation7]   ;;  %s930_s23 = scalar_lea.hbm %s1192_s2, 512 }
  0x25   :  { %s44_s19 = sshll.u32 %s1008_s18, 4  ;;  %p931_p2 = scmp.ne.s32.totalorder %s1192_s2, %s930_s23  ;;  %s45_s19 = int_to_ptr.vmem [resolvable:$true] %s44_s19 }
  0x26   :  { %p934_p3 = scmp.lt.u32.totalorder %s930_s23, %s1192_s2 }
  0x28   :  { %p936_p4 = pnand %p934_p3, %p931_p2 }
  0x2a   :  { %939 = shalt.err (!%p936_p4)
}
  0x2b   :  { %s940_s28 = scalar_lea.vmem %s45_s19, 512  ;;  %p945_p6 = scmp.lt.s32.totalorder %s45_s19, %s45_s19 }
  0x2c   :  { %p941_p5 = scmp.ne.s32.totalorder %s45_s19, %s940_s28  ;;  %p946_p7 = scmp.lt.s32.totalorder %s940_s28, %s940_s28 }
  0x2e   :  { %p947_p8 = por %p946_p7, %p945_p6 }
  0x30   :  { %p948_p9 = pnand %p947_p8, %p941_p5 }
  0x32   :  { %951 = shalt.err (!%p948_p9)
}
  0x33   :  { %50 = dma.hbm_to_vmem [thread:$0]  %s1192_s2, 512, %s45_s19, [#allocation6], %s1006_s30, %s1006_s30, %s1007_s6  }
  0x34   :  { %996 = dma.done.wait [#allocation3], 512  }
  0x35   :  { %997 = vsyncadd [#allocation3], 4294966784 }
  0x36   :  { %998 = dma.done.wait [#allocation6], 1024  }
  0x37   :  { %999 = vsyncadd [#allocation6], 4294966272  ;;  %v1009_v0 = vmov 0.0   ;;  %vm1010_vm0 = vmmov 0   ;;  %vm80_vm1 = vcmask 523264   ;;  %v72_v1 = vld [vmem:[#allocation5] sm:$0xff] }
  0x38   :  { %820 = vmatprep.subr.mxu0 %v1009_v0  ;;  %822 = vmatprep.mubr.msk.f32.mxu0 %vm1010_vm0, %v1009_v0  ;;  %v64_v2 = vld [vmem:[#allocation2] sm:$0xff]  ;;  %v73_v3 = vld [vmem:[#allocation5 + $0x8] sm:$0xff]  ;;  %v66_v6 = vld [vmem:[#allocation2 + $0x10] sm:$0xff]  ;;  %v1011_v17 = vmov 0   ;;  %vm409_vm8 = vcmask 64512  }
  0x39   :  { %825 = vmatprep.subr.mxu1 %v1009_v0  ;;  %827 = vmatprep.mubr.msk.f32.mxu1 %vm1010_vm0, %v1009_v0  ;;  %v68_v4 = vmul.f32 0.125, %v64_v2  ;;  %v65_v5 = vld [vmem:[#allocation2 + $0x8] sm:$0xff]  ;;  %v74_v7 = vld [vmem:[#allocation5 + $0x10] sm:$0xff]  ;;  %v67_v9 = vld [vmem:[#allocation2 + $0x18] sm:$0xff]  ;;  %v70_v11 = vmul.f32 0.125, %v66_v6 }
  0x3a   :  { %821 = vmatpush3.xpose.msk.msra.mxu0 %vm80_vm1, %v72_v1  ;;  %826 = vmatpush3.xpose.msk.msra.mxu1 %vm80_vm1, %v73_v3  ;;  %v69_v8 = vmul.f32 0.125, %v65_v5  ;;  %v75_v10 = vld [vmem:[#allocation5 + $0x18] sm:$0xff]  ;;  %v71_v12 = vmul.f32 0.125, %v67_v9  ;;  %v385_v13 = vld [vmem:[%s1193_s3] sm:$0x3]  ;;  %v77_v63 = vld [vmem:[#allocation7 + $0x8] sm:$0xff] }
  0x3b   :  { %830 = vmatprep.subr.mxu0 %v1009_v0  ;;  %835 = vmatprep.subr.mxu1 %v1009_v0  ;;  %v386_v14 = vld [vmem:[%s1193_s3 + $0x2] sm:$0x3]  ;;  %vm389_vm2 = vnez %v385_v13  ;;  %v387_v15 = vld [vmem:[%s1193_s3 + $0x4] sm:$0x3]  ;;  %v388_v16 = vld [vmem:[%s1193_s3 + $0x6] sm:$0x3] }
  0x3c   :  { %vm390_vm3 = vnez %v386_v14  ;;  %v393_v18 = vsel %vm389_vm2, 16843009, %v1011_v17  ;;  %vm391_vm4 = vnez %v387_v15  ;;  %vm392_vm5 = vnez %v388_v16  ;;  %v76_v62 = vld [vmem:[#allocation7] sm:$0xff]  ;;  %s1012_s3 = smov [#allocation9]  }
  0x3d   :  { %823 = vmatmul.mubr.msk.f32.vlgmr.msra.gmra.mrb[0].mxu0 %vm80_vm1, %v68_v4  ;;  %828 = vmatmul.mubr.msk.f32.vlgmr.msra.gmra.mrb[0].mxu1 %vm80_vm1, %v69_v8  ;;  %v394_v19 = vsel %vm390_vm3, 16843009, %v1011_v17  ;;  %v397_v20 = vunpack.c.0.s8 %v393_v18  ;;  %v395_v22 = vsel %vm391_vm4, 16843009, %v1011_v17  ;;  %v396_v23 = vsel %vm392_vm5, 16843009, %v1011_v17 }
  0x3e   :  { %831 = vmatpush3.xpose.msk.msra.mxu0 %vm80_vm1, %v74_v7  ;;  %832 = vmatprep.mubr.msk.f32.mxu0 %vm1010_vm0, %v1009_v0  ;;  %v398_v21 = vunpack.c.0.s8 %v394_v19  ;;  %v399_v24 = vunpack.c.0.s8 %v395_v22  ;;  %v400_v25 = vunpack.c.0.s8 %v396_v23  ;;  %v78_v7 = vld [vmem:[#allocation7 + $0x10] sm:$0xff]  ;;  %s775_s13 = sshll.u32 %s1012_s3, 4  ;;  %s776_s13 = int_to_ptr.vmem [resolvable:$true] %s775_s13 }
  0x3f   :  { %836 = vmatpush3.xpose.msk.msra.mxu1 %vm80_vm1, %v75_v10  ;;  %837 = vmatprep.mubr.msk.f32.mxu1 %vm1010_vm0, %v1009_v0  ;;  %vm401_vm6 = vcmp.ne.s32.totalorder %v397_v20, 0  ;;  %s952_s14 = scalar_lea.vmem %s776_s13, 512  ;;  %p957_p11 = scmp.lt.s32.totalorder %s776_s13, %s776_s13 }
  0x40   :  { %840 = vmatprep.subr.mxu0 %v1009_v0  ;;  %845 = vmatprep.subr.mxu1 %v1009_v0  ;;  %vm402_vm7 = vcmp.ne.s32.totalorder %v398_v21, 0  ;;  %vm403_vm9 = vcmp.ne.s32.totalorder %v399_v24, 0  ;;  %vm404_vm10 = vcmp.ne.s32.totalorder %v400_v25, 0  ;;  %p953_p10 = scmp.ne.s32.totalorder %s776_s13, %s952_s14  ;;  %p958_p12 = scmp.lt.s32.totalorder %s952_s14, %s952_s14 }
  0x41   :  { %833 = vmatmul.mubr.msk.f32.vlgmr.msra.gmra.mrb[2].mxu0 %vm80_vm1, %v70_v11  ;;  %v79_v11 = vld [vmem:[#allocation7 + $0x18] sm:$0xff] }
  0x42   :  { %838 = vmatmul.mubr.msk.f32.vlgmr.msra.gmra.mrb[2].mxu1 %vm80_vm1, %v71_v12  ;;  %842 = vmatprep.mubr.msk.f32.mxu0 %vm1010_vm0, %v1009_v0  ;;  %p959_p13 = por %p958_p12, %p957_p11 }
  0x43   :  { %847 = vmatprep.mubr.msk.f32.mxu1 %vm1010_vm0, %v1009_v0  ;;  %841 = vmatpush3.msra.mxu0 %v76_v62 }
  0x44   :  { %850 = vmatprep.subr.mxu0 %v1009_v0  ;;  %846 = vmatpush3.msra.mxu1 %v77_v63  ;;  %p960_p0 = pnand %p959_p13, %p953_p10 }
  0x45   :  { %855 = vmatprep.subr.mxu1 %v1009_v0 }
 0x110   :  { %v153_v26 = vpop.f32.mrb[0].mxu0  ;;  %v229_v27 = vpop.f32.mrb[0].mxu1 }
 0x111   :  { %v405_v28 = vsel %vm401_vm6, -1e+09, %v153_v26  ;;  %v824_v29 = vpop.f32.mrb[1].mxu0  ;;  %v406_v30 = vsel %vm402_vm7, -1e+09, %v229_v27  ;;  %v829_v31 = vpop.f32.mrb[1].mxu1 }
 0x112   :  { %v410_v32 = vsel %vm409_vm8, %v405_v28, -inf  ;;  %v413_v34 = vsel %vm409_vm8, %v406_v30, -inf }
 0x113   :  { %411 = vmax.xlane.f32.xlu0 %v410_v32 }
 0x114   :  { %v305_v33 = vpop.f32.mrb[2].mxu0 }
 0x115   :  { %v407_v35 = vsel %vm403_vm9, -1e+09, %v305_v33  ;;  %v834_v36 = vpop.f32.mrb[3].mxu0  ;;  %v381_v37 = vpop.f32.mrb[2].mxu1 }
 0x116   :  { %v416_v38 = vsel %vm409_vm8, %v407_v35, -inf  ;;  %v408_v39 = vsel %vm404_vm10, -1e+09, %v381_v37  ;;  %v839_v40 = vpop.f32.mrb[3].mxu1 }
 0x117   :  { %414 = vmax.xlane.f32.xlu0 %v413_v34  ;;  %417 = vmax.xlane.f32.xlu1 %v416_v38  ;;  %v419_v41 = vsel %vm409_vm8, %v408_v39, -inf }
 0x11b   :  { %420 = vmax.xlane.f32.xlu1 %v419_v41 }
 0x1a0   :  { %v412_v42 = vpop.xlane.xlu0 %411 }
 0x1a1   :  { %v422_v43 = vsub.f32 %v405_v28, %v412_v42 }
 0x1a3   :  { %v426_v44 = vmul.f32 1.442695, %v422_v43 }
 0x1a4   :  { %v415_v45 = vpop.xlane.xlu0 %414  ;;  %v418_v46 = vpop.xlane.xlu1 %417 }
 0x1a5   :  { %870 = vpow2.f32 %v426_v44  ;;  %v423_v47 = vsub.f32 %v406_v30, %v415_v45  ;;  %v424_v48 = vsub.f32 %v407_v35, %v418_v46 }
 0x1a7   :  { %v428_v49 = vmul.f32 1.442695, %v423_v47  ;;  %v430_v50 = vmul.f32 1.442695, %v424_v48 }
 0x1a8   :  { %v421_v51 = vpop.xlane.xlu1 %420 }
 0x1a9   :  { %872 = vpow2.f32 %v428_v49  ;;  %v425_v52 = vsub.f32 %v408_v39, %v421_v51 }
 0x1aa   :  { %874 = vpow2.f32 %v430_v50 }
 0x1ab   :  { %v432_v53 = vmul.f32 1.442695, %v425_v52 }
 0x1ad   :  { %876 = vpow2.f32 %v432_v53 }
 0x1af   :  { %v871_v54 = vpop.eup %870 }
 0x1b0   :  { %v434_v55 = vsel %vm409_vm8, %v871_v54, 0.0 }
 0x1b1   :  { %435 = vadd.xlane.f32.xlu0 %v434_v55 }
 0x1b3   :  { %v873_v56 = vpop.eup %872 }
 0x1b4   :  { %v875_v57 = vpop.eup %874  ;;  %v437_v58 = vsel %vm409_vm8, %v873_v56, 0.0 }
 0x1b5   :  { %438 = vadd.xlane.f32.xlu1 %v437_v58  ;;  %v440_v59 = vsel %vm409_vm8, %v875_v57, 0.0 }
 0x1b6   :  { %441 = vadd.xlane.f32.xlu0 %v440_v59 }
 0x1b7   :  { %v877_v60 = vpop.eup %876 }
 0x1b8   :  { %v443_v61 = vsel %vm409_vm8, %v877_v60, 0.0 }
 0x1b9   :  { %444 = vadd.xlane.f32.xlu1 %v443_v61 }
 0x23e   :  { %v436_v1 = vpop.xlane.xlu0 %435 }
 0x23f   :  { %878 = vrcp.f32 %v436_v1 }
 0x242   :  { %v439_v2 = vpop.xlane.xlu1 %438 }
 0x243   :  { %v442_v3 = vpop.xlane.xlu0 %441  ;;  %880 = vrcp.f32 %v439_v2 }
 0x244   :  { %882 = vrcp.f32 %v442_v3 }
 0x246   :  { %v445_v4 = vpop.xlane.xlu1 %444 }
 0x247   :  { %884 = vrcp.f32 %v445_v4 }
 0x249   :  { %v879_v5 = vpop.eup %878 }
 0x24a   :  { %v454_v6 = vmul.f32 %v879_v5, %v871_v54 }
 0x24c   :  { %754 = vst.msk [vmem:[#allocation9] sm:$0xff] %vm409_vm8, %v454_v6  ;;  %843 = vmatmul.mubr.msk.f32.vlgmr.msra.gmra.mrb[4].mxu0 %vm409_vm8, %v454_v6 }
 0x24d   :  { %v881_v8 = vpop.eup %880  ;;  %851 = vmatpush3.msra.mxu0 %v78_v7  ;;  %852 = vmatprep.mubr.msk.f32.mxu0 %vm1010_vm0, %v1009_v0 }
 0x24e   :  { %v883_v9 = vpop.eup %882  ;;  %v455_v10 = vmul.f32 %v881_v8, %v873_v56 }
 0x24f   :  { %v456_v12 = vmul.f32 %v883_v9, %v875_v57 }
 0x250   :  { %755 = vst.msk [vmem:[#allocation9 + $0x8] sm:$0xff] %vm409_vm8, %v455_v10  ;;  %848 = vmatmul.mubr.msk.f32.vlgmr.msra.gmra.mrb[4].mxu1 %vm409_vm8, %v455_v10 }
 0x251   :  { %v885_v13 = vpop.eup %884  ;;  %756 = vst.msk [vmem:[#allocation9 + $0x10] sm:$0xff] %vm409_vm8, %v456_v12  ;;  %853 = vmatmul.mubr.msk.f32.vlgmr.msra.gmra.mrb[6].mxu0 %vm409_vm8, %v456_v12  ;;  %856 = vmatpush3.msra.mxu1 %v79_v11 }
 0x252   :  { %v457_v14 = vmul.f32 %v885_v13, %v877_v60  ;;  %857 = vmatprep.mubr.msk.f32.mxu1 %vm1010_vm0, %v1009_v0 }
 0x254   :  { %757 = vst.msk [vmem:[#allocation9 + $0x18] sm:$0xff] %vm409_vm8, %v457_v14  ;;  %858 = vmatmul.mubr.msk.f32.vlgmr.msra.gmra.mrb[6].mxu1 %vm409_vm8, %v457_v14 }
 0x255   :  { %963 = shalt.err (!%p960_p0)
}
 0x256   :  { %s964_s1 = scalar_lea.hbm %s1195_s5, 512 }
 0x257   :  { %p965_p1 = scmp.ne.s32.totalorder %s1195_s5, %s964_s1  ;;  %p968_p2 = scmp.lt.u32.totalorder %s964_s1, %s1195_s5 }
 0x259   :  { %p970_p3 = pnand %p968_p2, %p965_p1 }
 0x25b   :  { %973 = shalt.err (!%p970_p3)
}
 0x25c   :  { %781 = dma.vmem_to_hbm [thread:$0]  %s776_s13, 512, %s1195_s5, [#allocation10], %s1006_s30, %s1006_s30, %s1007_s6  }
 0x25d   :  { %s1013_s24 = smov [#allocation8]  }
 0x25e   :  { %s763_s25 = sshll.u32 %s1013_s24, 4  ;;  %s764_s25 = int_to_ptr.vmem [resolvable:$true] %s763_s25 }
 0x25f   :  { %s974_s5 = scalar_lea.vmem %s764_s25, 512  ;;  %p979_p5 = scmp.lt.s32.totalorder %s764_s25, %s764_s25 }
 0x260   :  { %p975_p4 = scmp.ne.s32.totalorder %s764_s25, %s974_s5  ;;  %p980_p6 = scmp.lt.s32.totalorder %s974_s5, %s974_s5 }
 0x262   :  { %p981_p7 = por %p980_p6, %p979_p5 }
 0x264   :  { %p982_p8 = pnand %p981_p7, %p975_p4 }
 0x31f   :  { %v527_v0 = vpop.f32.mrb[4].mxu0 }
 0x320   :  { %750 = vst.msk [vmem:[#allocation8] sm:$0xff] %vm80_vm1, %v527_v0  ;;  %v844_v15 = vpop.f32.mrb[5].mxu0 }
 0x323   :  { %v600_v16 = vpop.f32.mrb[4].mxu1 }
 0x324   :  { %751 = vst.msk [vmem:[#allocation8 + $0x8] sm:$0xff] %vm80_vm1, %v600_v16  ;;  %v673_v17 = vpop.f32.mrb[6].mxu0  ;;  %v849_v18 = vpop.f32.mrb[5].mxu1 }
 0x325   :  { %752 = vst.msk [vmem:[#allocation8 + $0x10] sm:$0xff] %vm80_vm1, %v673_v17  ;;  %v854_v19 = vpop.f32.mrb[7].mxu0 }
 0x327   :  { %v746_v20 = vpop.f32.mrb[6].mxu1 }
 0x328   :  { %753 = vst.msk [vmem:[#allocation8 + $0x18] sm:$0xff] %vm80_vm1, %v746_v20  ;;  %v859_v21 = vpop.f32.mrb[7].mxu1 }
 0x329   :  { %985 = shalt.err (!%p982_p8)
}
 0x32a   :  { %s986_s28 = scalar_lea.hbm %s1194_s4, 512 }
 0x32b   :  { %p987_p9 = scmp.ne.s32.totalorder %s1194_s4, %s986_s28  ;;  %p990_p10 = scmp.lt.u32.totalorder %s986_s28, %s1194_s4 }
 0x32d   :  { %p992_p11 = pnand %p990_p10, %p987_p9 }
 0x32f   :  { %995 = shalt.err (!%p992_p11)
}
 0x330   :  { %769 = dma.vmem_to_hbm [thread:$0]  %s764_s25, 512, %s1194_s4, [#allocation4], %s1006_s30, %s1006_s30, %s1007_s6  }
 0x331   :  { %1000 = dma.done.wait [#allocation4], 512  }
 0x332   :  { %1001 = vsyncadd [#allocation4], 4294966784 }
 0x333   :  { %1002 = dma.done.wait [#allocation10], 512  }
 0x334   :  { %1003 = vsyncadd [#allocation10], 4294966784 }
 0x335   :  { %788 = vsyncpa [#allocation3], 1 }
 0x336   :  { %789 = vsyncpa [#allocation6], 1 }
 0x337   :  { %790 = vsyncpa [#allocation4], 1 }
 0x338   :  { %791 = vsyncpa [#allocation10], 1 }

</bundles_post_ra>
